<compile_context>
chip_gen: v6e
topology: v6e:2x2x1
jax: 0.10.0
libtpu: 0.0.40
codegen_flags: <defaults>
</compile_context>

<pallas_src>
import functools

import jax
import jax.numpy as jnp
from jax.experimental import pallas as pl
from jax.experimental.pallas import tpu as pltpu

LANE = 128


def _round_up(x, m):
    return (x + m - 1) // m * m


def _siamese_kernel(patches_ref, wconv_ref, whead_ref, out_ref, gap_ref, *,
                    inv_hw):
    """Grid = (branch, batch, m_tile); m_tile is the GAP reduction axis.

    patches_ref: (1, 1, tile_m, Kp)  bf16 im2col patches (+ ones column for bias)
    wconv_ref:   (Kp, Coutp)         bf16 flattened conv weight; row K-1 carries
                                     the conv bias and a constant 1.0 in spare
                                     channel `Cout` (folds the head bias later).
    whead_ref:   (Coutp, Nclsp)      bf16 head weight; row `Cout` carries the
                                     head bias (multiplied by the constant-1
                                     feature channel).
    out_ref:     (1, 1, 8, Nclsp)    f32 logits replicated over 8 sublanes so the
                                     store is an unmasked full tile; the wrapper
                                     keeps sublane 0 and strips lane padding.
    gap_ref:     (1, Coutp)          f32 global-average-pool accumulator scratch.
    """
    m = pl.program_id(2)

    @pl.when(m == 0)
    def _():
        gap_ref[...] = jnp.zeros_like(gap_ref)

    # Conv2d(pad=1) + bias as one MXU GEMM over im2col patches (f32 accumulate).
    conv = jnp.dot(patches_ref[0, 0], wconv_ref[...],
                   preferred_element_type=jnp.float32)          # (tile_m, Coutp)
    conv = jnp.maximum(conv, 0.0)                               # ReLU
    # Global-average-pool partial sum for this m tile (XLU/VPU; MXU stays free).
    gap_ref[...] += jnp.sum(conv, axis=0, keepdims=True)        # (1, Coutp)

    @pl.when(m == pl.num_programs(2) - 1)
    def _():
        feat = gap_ref[...] * inv_hw                            # (1, Coutp) f32
        # Linear head; bias folded in via the constant-1 feature channel.
        logits = jnp.dot(feat.astype(jnp.bfloat16), whead_ref[...],
                         preferred_element_type=jnp.float32)    # (1, Nclsp)
        out_ref[0, 0] = jnp.broadcast_to(logits, out_ref.shape[2:])


def _im2col(x_nchw, KH, KW):
    """NCHW -> (N, H*W, KH*KW*Cin) patches for a 'same' (pad=K//2) conv."""
    N, Cin, H, W = x_nchw.shape
    x = jnp.transpose(x_nchw, (0, 2, 3, 1))                     # NHWC
    ph, pw = KH // 2, KW // 2
    xp = jnp.pad(x, ((0, 0), (ph, ph), (pw, pw), (0, 0)))
    cols = [xp[:, dy:dy + H, dx:dx + W, :]
            for dy in range(KH) for dx in range(KW)]            # each (N,H,W,Cin)
    patches = jnp.concatenate(cols, axis=-1)                    # (N,H,W,KH*KW*Cin)
    return patches.reshape(N, H * W, KH * KW * Cin)


@jax.jit
def fused_forward(images, params):
    """images: (NB, B, Cin, H, W); NB siamese branches share `params`."""
    wconv, bconv, whead, bhead = params
    NB, B, Cin, H, W = images.shape
    KH, KW, _, Cout = wconv.shape
    NCLS = whead.shape[1]
    HW = H * W

    K = KH * KW * Cin + 1                 # +1: conv bias folded as a ones column
    # K is the HBM lane dim of `patches`; keep it small (VMEM lane-pads to 128
    # anyway).  MXU K-underfill at K=37 is a data-shape property, not a tiling bug.
    Kp = _round_up(K, 16)
    Coutp = _round_up(Cout + 1, LANE)     # +1 spare channel folds the head bias
    Nclsp = _round_up(NCLS, LANE)         # lane-dense (unmasked) output stores

    # M (spatial) tile: pipelined reduction axis.  128 keeps per-step VMEM tiny;
    # for real image sizes raise toward 512 (v5e/v6e) but halve on v7x (64 MiB VMEM).
    tile_m = 128 if (HW % 128 == 0 and HW > 128) else HW
    assert HW % tile_m == 0 and tile_m % 8 == 0
    n_m = HW // tile_m

    # --- im2col in bf16 (cast BEFORE building the 9x patches, halving traffic) ---
    imgs = images.reshape(NB * B, Cin, H, W).astype(jnp.bfloat16)
    patches = _im2col(imgs, KH, KW)                              # (NB*B, HW, K-1)
    ones = jnp.ones((NB * B, HW, 1), jnp.bfloat16)
    kpad = jnp.zeros((NB * B, HW, Kp - K), jnp.bfloat16)
    patches = jnp.concatenate([patches, ones, kpad], axis=-1)    # (NB*B, HW, Kp)
    patches = patches.reshape(NB, B, HW, Kp)

    # --- flattened conv weight: bias row + constant-1 spare channel, bf16 ---
    w_aug = jnp.zeros((Kp, Coutp), jnp.float32)
    w_aug = w_aug.at[:K - 1, :Cout].set(wconv.reshape(KH * KW * Cin, Cout))
    w_aug = w_aug.at[K - 1, :Cout].set(bconv.reshape(Cout))      # conv bias
    w_aug = w_aug.at[K - 1, Cout].set(1.0)                       # head-bias channel
    w_aug = w_aug.astype(jnp.bfloat16)

    # --- head weight with the head bias folded into row `Cout`, bf16 ---
    whead_p = jnp.zeros((Coutp, Nclsp), jnp.float32)
    whead_p = whead_p.at[:Cout, :NCLS].set(whead)
    whead_p = whead_p.at[Cout, :NCLS].set(bhead.reshape(NCLS))
    whead_p = whead_p.astype(jnp.bfloat16)

    out = pl.pallas_call(
        functools.partial(_siamese_kernel, inv_hw=1.0 / HW),
        out_shape=jax.ShapeDtypeStruct((NB, B, 8, Nclsp), jnp.float32),
        grid_spec=pltpu.PrefetchScalarGridSpec(
            num_scalar_prefetch=0,
            grid=(NB, B, n_m),
            in_specs=[
                pl.BlockSpec((1, 1, tile_m, Kp), lambda n, b, m: (n, b, m, 0)),
                pl.BlockSpec((Kp, Coutp), lambda n, b, m: (0, 0)),
                pl.BlockSpec((Coutp, Nclsp), lambda n, b, m: (0, 0)),
            ],
            out_specs=pl.BlockSpec((1, 1, 8, Nclsp),
                                   lambda n, b, m: (n, b, 0, 0)),
            scratch_shapes=[pltpu.VMEM((1, Coutp), jnp.float32)],
        ),
        compiler_params=pltpu.CompilerParams(
            # branch & batch parallel (megacore), spatial m is the reduction axis
            dimension_semantics=("parallel", "parallel", "arbitrary"),
            # explicit scoped-VMEM budget, headroom below v7x's 64 MiB physical
            vmem_limit_bytes=48 * 1024 * 1024),
    )(patches, w_aug, whead_p)

    return out[:, :, 0, :NCLS]            # keep sublane 0, strip lane padding


def model_forward(drone_image, satellite_image, params):
    """Mirrors Model.forward: returns (drone_res, satellite_res); None passthrough.

    All present branches are stacked and run in a single fused pallas_call.
    """
    branches = [img for img in (drone_image, satellite_image) if img is not None]
    if not branches:
        return None, None
    results = fused_forward(jnp.stack(branches, axis=0), params)   # (NB, B, NCLS)
    idx = 0
    if drone_image is not None:
        drone_res = results[idx]
        idx += 1
    else:
        drone_res = None
    satellite_res = results[idx] if satellite_image is not None else None
    return drone_res, satellite_res


def init_params(key, Cin, Cout, NCLS, KH=3, KW=3):
    k1, k2, k3, k4 = jax.random.split(key, 4)
    wconv = jax.random.normal(k1, (KH, KW, Cin, Cout), jnp.float32) * 0.05
    bconv = jax.random.normal(k2, (1, Cout), jnp.float32) * 0.01
    whead = jax.random.normal(k3, (Cout, NCLS), jnp.float32) * 0.05
    bhead = jax.random.normal(k4, (1, NCLS), jnp.float32) * 0.01
    return wconv, bconv, whead, bhead


def reference_forward(x_nchw, params):
    """Pure-JAX f32 reference: Conv2d(pad=1)+bias+ReLU+GAP+Linear."""
    wconv, bconv, whead, bhead = params
    KH, KW, Cin, Cout = wconv.shape
    N, _, H, W = x_nchw.shape
    x = jnp.transpose(x_nchw, (0, 2, 3, 1))
    xp = jnp.pad(x, ((0, 0), (KH // 2, KH // 2), (KW // 2, KW // 2), (0, 0)))
    out = jnp.zeros((N, H, W, Cout), jnp.float32)
    for dy in range(KH):
        for dx in range(KW):
            out = out + jnp.einsum('nhwc,co->nhwo',
                                   xp[:, dy:dy + H, dx:dx + W, :], wconv[dy, dx])
    out = jnp.maximum(out + bconv.reshape(1, 1, 1, Cout), 0.0)
    feat = out.mean(axis=(1, 2))
    return feat @ whead + bhead.reshape(1, -1)


if __name__ == "__main__":
    B, Cin, H, W = 2, 4, 16, 16
    Cout, NCLS = 32, 8

    key = jax.random.PRNGKey(0)
    k_params, k_drone, k_sat = jax.random.split(key, 3)

    params = init_params(k_params, Cin, Cout, NCLS)
    drone_image = jax.random.normal(k_drone, (B, Cin, H, W), jnp.float32)
    satellite_image = jax.random.normal(k_sat, (B, Cin, H, W), jnp.float32)

    drone_res, satellite_res = model_forward(drone_image, satellite_image, params)
    jax.block_until_ready((drone_res, satellite_res))

    assert drone_res.shape == (B, NCLS) and satellite_res.shape == (B, NCLS)

    # Loose-tolerance check vs f32 reference (conv/head GEMM operands are bf16).
    ref_d = reference_forward(drone_image, params)
    ref_s = reference_forward(satellite_image, params)
    assert jnp.allclose(drone_res, ref_d, rtol=2e-2, atol=2e-2)
    assert jnp.allclose(satellite_res, ref_s, rtol=2e-2, atol=2e-2)

    # None passthrough, matching Model.forward semantics.
    only_d, none_s = model_forward(drone_image, None, params)
    jax.block_until_ready(only_d)
    assert none_s is None and only_d.shape == (B, NCLS)
    assert jnp.allclose(only_d, ref_d, rtol=2e-2, atol=2e-2)

    print("KERNEL_OK")
</pallas_src>

<mosaic_0001>
module attributes {stable_mosaic.version = 11 : i64} {
  func.func @_siamese_kernel(%arg0: i32, %arg1: i32, %arg2: i32, %arg3: memref<1x1x128x48xbf16, #tpu.memory_space<vmem>>, %arg4: memref<48x128xbf16, #tpu.memory_space<vmem>>, %arg5: memref<128x128xbf16, #tpu.memory_space<vmem>>, %arg6: memref<1x1x8x128xf32, #tpu.memory_space<vmem>>, %arg7: memref<1x128xf32, #tpu.memory_space<vmem>>) attributes {dimension_semantics = [#tpu.dimension_semantics<parallel>, #tpu.dimension_semantics<parallel>, #tpu.dimension_semantics<arbitrary>], iteration_bounds = array<i64: 2, 2, 2>, scalar_prefetch = 0 : i64, scratch_operands = 1 : i64, tpu.core_type = #tpu.core_type<tc>, window_params = [{transform_indices = @transform_0, window_bounds = array<i64: 1, 1, 128, 48>}, {pipeline_mode = #tpu.pipeline_mode<synchronous>, transform_indices = @transform_1, window_bounds = array<i64: 48, 128>}, {pipeline_mode = #tpu.pipeline_mode<synchronous>, transform_indices = @transform_2, window_bounds = array<i64: 128, 128>}, {transform_indices = @transform_3, window_bounds = array<i64: 1, 1, 8, 128>}]} {
    %c0_i32 = arith.constant 0 : i32
    %0 = arith.cmpi eq, %arg2, %c0_i32 : i32
    %1 = arith.extui %0 : i1 to i32
    %c0_i32_0 = arith.constant 0 : i32
    %2 = arith.cmpi ne, %1, %c0_i32_0 : i32
    scf.if %2 {
      %cst_13 = arith.constant 0.000000e+00 : f32
      %17 = vector.broadcast %cst_13 : f32 to vector<1x128xf32>
      %c0_14 = arith.constant 0 : index
      %c0_15 = arith.constant 0 : index
      %18 = vector.load %arg7[%c0_14, %c0_15] : memref<1x128xf32, #tpu.memory_space<vmem>>, vector<1x128xf32>
      tpu.vector_store %arg7[%c0_14, %c0_15], %17 {strides = array<i32>} : memref<1x128xf32, #tpu.memory_space<vmem>>, vector<1x128xf32>,
    } else {
    }
    %c0 = arith.constant 0 : index
    %c0_1 = arith.constant 0 : index
    %c0_2 = arith.constant 0 : index
    %c0_3 = arith.constant 0 : index
    %3 = vector.load %arg3[%c0, %c0_1, %c0_2, %c0_3] : memref<1x1x128x48xbf16, #tpu.memory_space<vmem>>, vector<1x1x128x48xbf16>
    %4 = vector.shape_cast %3 : vector<1x1x128x48xbf16> to vector<128x48xbf16>
    %c0_4 = arith.constant 0 : index
    %c0_5 = arith.constant 0 : index
    %5 = vector.load %arg4[%c0_4, %c0_5] : memref<48x128xbf16, #tpu.memory_space<vmem>>, vector<48x128xbf16>
    %cst = arith.constant dense<0.000000e+00> : vector<128x128xf32>
    %6 = tpu.matmul %4, %5, %cst {dimension_numbers = #tpu.dot_dimension_numbers<[1], [0], [0], [1], [0, 0, 1, 1], [], []>} : vector<128x48xbf16>, vector<48x128xbf16>, vector<128x128xf32> -> vector<128x128xf32>
    %cst_6 = arith.constant 0.000000e+00 : f32
    %7 = vector.broadcast %cst_6 : f32 to vector<128x128xf32>
    %8 = arith.maximumf %6, %7 : vector<128x128xf32>
    %c0_7 = arith.constant 0 : index
    %c0_8 = arith.constant 0 : index
    %9 = vector.load %arg7[%c0_7, %c0_8] : memref<1x128xf32, #tpu.memory_space<vmem>>, vector<1x128xf32>
    %cst_9 = arith.constant dense<0.000000e+00> : vector<128xf32>
    %10 = vector.multi_reduction <add>, %8, %cst_9 [0] : vector<128x128xf32> to vector<128xf32>
    %11 = vector.shape_cast %10 : vector<128xf32> to vector<1x128xf32>
    %12 = arith.addf %9, %11 : vector<1x128xf32>
    %c0_10 = arith.constant 0 : index
    %c0_11 = arith.constant 0 : index
    %13 = vector.load %arg7[%c0_10, %c0_11] : memref<1x128xf32, #tpu.memory_space<vmem>>, vector<1x128xf32>
    tpu.vector_store %arg7[%c0_10, %c0_11], %12 {strides = array<i32>} : memref<1x128xf32, #tpu.memory_space<vmem>>, vector<1x128xf32>,
    %c1_i32 = arith.constant 1 : i32
    %14 = arith.cmpi eq, %arg2, %c1_i32 : i32
    %15 = arith.extui %14 : i1 to i32
    %c0_i32_12 = arith.constant 0 : i32
    %16 = arith.cmpi ne, %15, %c0_i32_12 : i32
    scf.if %16 {
      %c0_13 = arith.constant 0 : index
      %c0_14 = arith.constant 0 : index
      %17 = vector.load %arg7[%c0_13, %c0_14] : memref<1x128xf32, #tpu.memory_space<vmem>>, vector<1x128xf32>
      %cst_15 = arith.constant 3.906250e-03 : f32
      %18 = vector.broadcast %cst_15 : f32 to vector<1x128xf32>
      %19 = arith.mulf %17, %18 : vector<1x128xf32>
      %20 = arith.truncf %19 : vector<1x128xf32> to vector<1x128xbf16>
      %c0_16 = arith.constant 0 : index
      %c0_17 = arith.constant 0 : index
      %21 = vector.load %arg5[%c0_16, %c0_17] : memref<128x128xbf16, #tpu.memory_space<vmem>>, vector<128x128xbf16>
      %cst_18 = arith.constant dense<0.000000e+00> : vector<1x128xf32>
      %22 = tpu.matmul %20, %21, %cst_18 {dimension_numbers = #tpu.dot_dimension_numbers<[1], [0], [0], [1], [0, 0, 1, 1], [], []>} : vector<1x128xbf16>, vector<128x128xbf16>, vector<1x128xf32> -> vector<1x128xf32>
      %23 = vector.shape_cast %22 : vector<1x128xf32> to vector<1x128xf32>
      %24 = vector.broadcast %23 : vector<1x128xf32> to vector<8x128xf32>
      %c0_19 = arith.constant 0 : index
      %c0_20 = arith.constant 0 : index
      %c0_21 = arith.constant 0 : index
      %c0_22 = arith.constant 0 : index
      %25 = vector.load %arg6[%c0_19, %c0_20, %c0_21, %c0_22] : memref<1x1x8x128xf32, #tpu.memory_space<vmem>>, vector<1x1x8x128xf32>
      %26 = vector.shape_cast %25 : vector<1x1x8x128xf32> to vector<8x128xf32>
      %27 = vector.shape_cast %24 : vector<8x128xf32> to vector<1x1x8x128xf32>
      tpu.vector_store %arg6[%c0_19, %c0_20, %c0_21, %c0_22], %27 {strides = array<i32>} : memref<1x1x8x128xf32, #tpu.memory_space<vmem>>, vector<1x1x8x128xf32>,
    } else {
    }
    return
  }
  func.func @transform_0(%arg0: i32, %arg1: i32, %arg2: i32) -> (i32, i32, i32, i32) {
    %c0_i32 = arith.constant 0 : i32
    %c0_i32_0 = arith.constant 0 : i32
    return %arg0, %arg1, %arg2, %c0_i32 : i32, i32, i32, i32
  }
  func.func @transform_1(%arg0: i32, %arg1: i32, %arg2: i32) -> (i32, i32) {
    %c0_i32 = arith.constant 0 : i32
    %c0_i32_0 = arith.constant 0 : i32
    %c0_i32_1 = arith.constant 0 : i32
    return %c0_i32, %c0_i32_0 : i32, i32
  }
  func.func @transform_2(%arg0: i32, %arg1: i32, %arg2: i32) -> (i32, i32) {
    %c0_i32 = arith.constant 0 : i32
    %c0_i32_0 = arith.constant 0 : i32
    %c0_i32_1 = arith.constant 0 : i32
    return %c0_i32, %c0_i32_0 : i32, i32
  }
  func.func @transform_3(%arg0: i32, %arg1: i32, %arg2: i32) -> (i32, i32, i32, i32) {
    %c0_i32 = arith.constant 0 : i32
    %c0_i32_0 = arith.constant 0 : i32
    %c0_i32_1 = arith.constant 0 : i32
    return %arg0, %arg1, %c0_i32, %c0_i32_0 : i32, i32, i32, i32
  }
}

</mosaic_0001>

<bundles_post_ra>
// kernel: fused_forward.1
= control target key start
LH: loop header
LB: loop body
LE: loop exit
PB: predicated region body
PF: predicated region fallthrough
CT: control target
= control target key end

     0   :  { %s957_s12 = smov 0   ;;  %s959_s13 = smov 0   ;;  %s1085_s0 = inlined_call_operand.vmem [shape: bf16[2,2,256,48], index: 0, kind: input, shape index: {}]   ;;  %s1086_s1 = inlined_call_operand.vmem [shape: bf16[48,128], index: 1, kind: input, shape index: {}]   ;;  %s1087_s2 = inlined_call_operand.vmem [shape: bf16[128,128], index: 2, kind: input, shape index: {}]   ;;  %s1088_s3 = inlined_call_operand.vmem [shape: f32[2,2,8,128], index: 3, kind: output, shape index: {}]  }
   0x1   :  { %s961_s14 = smov 0   ;;  %s963_s15 = smov 0  }
   0x2   :  { %s965_s16 = smov 0   ;;  %s967_s17 = smov 0  }
   0x3   :  { %s969_s18 = smov 0  }
   0x4 LB: > { %s25_s19 = sadd.s32 1, %s920_s15  ;;  %s28_s20 = sadd.s32 1, %s924_s16  ;;  %s932_s18 = sphi %s969_s18, %s13_s18   ;;  %s928_s17 = sphi %s967_s17, %s1094_s17   ;;  %s924_s16 = sphi %s965_s16, %s1093_s16   ;;  %s920_s15 = sphi %s963_s15, %s1092_s15   ;;  %s916_s14 = sphi %s961_s14, %s1091_s14   ;;  %s912_s13 = sphi %s959_s13, %s1090_s13   ;;  %s908_s12 = sphi %s957_s12, %s1089_s12  }
   0x5   : > { %p26_p0 = scmp.ge.s32.totalorder %s25_s19, 2  ;;  %p694_p1 = scmp.ge.s32.totalorder %s932_s18, 1 }
   0x6   : > { %p171_p2 = scmp.lt.s32.totalorder %s932_s18, 9  ;;  %s32_s21 = sadd.s32 1, %s928_s17 }
   0x7   : > { %s1096_s19 = smov (%p26_p0, %s25_s19), 0  ;;  %s1098_s20 = smov (!%p26_p0, %s28_s20), %s924_s16 }
   0x8   : > { %p172_p3 = pnand %p694_p1, %p171_p2  ;;  %p30_p4 = scmp.ge.s32.totalorder %s1098_s20, 2 }
   0x9   : > { %s695_s22 = sshll.u32 (!%p172_p3), %s908_s12, 4  ;;  %p207_p6 = scmp.lt.s32.totalorder (!%p172_p3), %s916_s14, 1 }
   0xa   : > { %s1100_s20 = smov (%p30_p4, %s1098_s20), 0  ;;  %s1102_s21 = smov (!%p30_p4, %s32_s21), %s928_s17 }
   0xb   : > { %p34_p5 = scmp.ge.s32.totalorder %s1102_s21, 2  ;;  %175 = sbr.rel (%p172_p3) target bundleno = 520 (0x208), region = 32 }
   0xc   : > { %p209_p7 = scmp.lt.s32.totalorder (!%p172_p3), %s912_s13, 1  ;;  %p211_p8 = scmp.lt.s32.totalorder (!%p172_p3), %s695_s22, 31 }
   0xd   : > { %s1104_s21 = smov (%p34_p5, %s1102_s21), 0  ;;  %p701_p9 = scmp.ne.s32.totalorder (!%p172_p3), %s908_s12, 0 }
  0x10   : > { %s1106_s14 = smov (!%p207_p6, %s916_s14), 1  ;;  %s1108_s13 = smov (!%p209_p7, %s912_s13), 1 }
  0x11   : > { %s1110_s22 = smov (!%p211_p8, %s695_s22), 31  ;;  %s696_s23 = sshll.u32 %s1108_s13, 5 }
  0x12   : > { %s697_s24 = sshll.u32 %s1106_s14, 6  ;;  %s214_s25 = sadd.s32 %s696_s23, %s1110_s22 }
  0x13   : > { %s699_s26 = sshll.u32 %s1106_s14, 1  ;;  %s216_s27 = sadd.s32 %s697_s24, %s214_s25 }
  0x14   : > { %s225_s28 = sadd.s32 %s699_s26, %s1108_s13  ;;  %s698_s29 = sshll.u32 %s216_s27, 2 }
  0x15   : > { %s700_s30 = sshll.u32 %s225_s28, 3  ;;  %s1005_s6 = scalar_lea.vmem %s1085_s0, %s698_s29 }
  0x16   : > { %s1010_s9 = scalar_lea.vmem %s1088_s3, %s700_s30  ;;  %232 = sbr.rel (%p701_p9) target bundleno = 29 (0x1d), region = 36 }
  0x1b   : > { %v934_v0 = vmov 0.0  }
  0x1c   : > { %233 = vst [vmem:[#allocation2] sm:$0x1] %v934_v0 }
  0x1d PF: > { %v859_v1 = vld [vmem:[%s1086_s1 + $0x10] sm:$0xff]   ;;  %v860_v2 = vld [vmem:[%s1086_s1 + $0x8] sm:$0xff]   ;;  %vm314_vm0 = vcmask 392192   ;;  %v862_v3 = vld [vmem:[%s1005_s6] sm:$0xff]   ;;  %p721_p10 = scmp.ne.s32.totalorder %s908_s12, 1 }
  0x1e   : > { %752 = vmatprep.subr.bf16.mxu0 %v859_v1  ;;  %794 = vmatprep.subr.bf16.mxu1 %v859_v1  ;;  %v861_v4 = vld [vmem:[%s1086_s1] sm:$0xff]   ;;  %v863_v6 = vld [vmem:[%s1005_s6 + $0x8] sm:$0xff]   ;;  %v864_v8 = vld [vmem:[%s1005_s6 + $0x10] sm:$0xff]  }
  0x1f   : > { %753 = vmatpush3.bf16.msra.mxu0 %v859_v1  ;;  %797 = vmatpush3.bf16.msra.mxu1 %v859_v1  ;;  %v866_v5 = vld [vmem:[%s1005_s6 + $0x20] sm:$0xff]   ;;  %v867_v7 = vld [vmem:[%s1005_s6 + $0x28] sm:$0xff]   ;;  %v868_v9 = vld [vmem:[%s1005_s6 + $0x30] sm:$0xff]  }
  0x20   : > { %754 = vmatprep.subr.bf16.mxu0 %v860_v2  ;;  %795 = vmatprep.subr.bf16.mxu1 %v860_v2  ;;  %v865_v10 = vld [vmem:[%s1005_s6 + $0x18] sm:$0xff]  }
  0x21   : > { %758 = vmatprep.mubr.msk.bf16.mxu0 %vm314_vm0, %v862_v3  ;;  %766 = vmatprep.mubr.msk.bf16.mxu1 %vm314_vm0, %v866_v5  ;;  %v869_v11 = vld [vmem:[%s1005_s6 + $0x38] sm:$0xff]  }
  0x23   : > { %755 = vmatpush3.bf16.msra.mxu0 %v860_v2  ;;  %798 = vmatpush3.bf16.msra.mxu1 %v860_v2  ;;  %v452_v0 = vld [vmem:[#allocation2] sm:$0x1] }
  0x24   : > { %756 = vmatprep.subr.bf16.mxu0 %v861_v4  ;;  %796 = vmatprep.subr.bf16.mxu1 %v861_v4 }
  0x27   : > { %757 = vmatpush3.bf16.msra.mxu0 %v861_v4  ;;  %799 = vmatpush3.bf16.msra.mxu1 %v861_v4 }
  0x2a   : > { %759 = vmatmul.mubr.msk.bf16.vlgmr.msra.gmra.mxu0 %vm314_vm0, %v863_v6  ;;  %767 = vmatmul.mubr.msk.bf16.vlgmr.msra.gmra.mxu1 %vm314_vm0, %v867_v7 }
  0x2b   : > { %762 = vmatprep.mubr.msk.bf16.mxu0 %vm314_vm0, %v864_v8  ;;  %770 = vmatprep.mubr.msk.bf16.mxu1 %vm314_vm0, %v868_v9 }
  0x32   : > { %763 = vmatmul.mubr.msk.bf16.gmra.mxu0 %vm314_vm0, %v865_v10  ;;  %771 = vmatmul.mubr.msk.bf16.gmra.mxu1 %vm314_vm0, %v869_v11 }
  0xea   : > { %v760_v12 = vpop.f32.mrf.mxu0  ;;  %v768_v13 = vpop.f32.mrf.mxu1 }
  0xeb   : > { %v438_v22 = vmax.f32 %v760_v12, 0.0  ;;  %v446_v45 = vmax.f32 %v768_v13, 0.0 }
  0xec   : > { %v373_v14 = vpop.f32.mrf.mxu0  ;;  %v405_v16 = vpop.f32.mrf.mxu1 }
  0xed   : > { %v436_v18 = vmax.f32 %v373_v14, 0.0  ;;  %v444_v40 = vmax.f32 %v405_v16, 0.0 }
  0xee   : > { %v761_v15 = vpop.f32.mrf.mxu0  ;;  %v769_v21 = vpop.f32.mrf.mxu1 }
  0xef   : > { %v439_v25 = vmax.f32 %v761_v15, 0.0  ;;  %v447_v47 = vmax.f32 %v769_v21, 0.0 }
  0xf0   : > { %v376_v17 = vpop.f32.mrf.mxu0  ;;  %v408_v28 = vpop.f32.mrf.mxu1 }
  0xf1   : > { %v437_v19 = vmax.f32 %v376_v17, 0.0  ;;  %v445_v42 = vmax.f32 %v408_v28, 0.0 }
  0xf2   : > { %v764_v20 = vpop.f32.mrf.mxu0  ;;  %v772_v34 = vpop.f32.mrf.mxu1 }
  0xf3   : > { %v453_v23 = vadd.f32 %v437_v19, %v436_v18  ;;  %v442_v35 = vmax.f32 %v764_v20, 0.0  ;;  %v450_v54 = vmax.f32 %v772_v34, 0.0 }
  0xf4   : > { %v389_v24 = vpop.f32.mrf.mxu0  ;;  %v421_v39 = vpop.f32.mrf.mxu1 }
  0xf5   : > { %v454_v26 = vadd.f32 %v453_v23, %v438_v22  ;;  %v440_v29 = vmax.f32 %v389_v24, 0.0  ;;  %v448_v50 = vmax.f32 %v421_v39, 0.0 }
  0xf6   : > { %v765_v27 = vpop.f32.mrf.mxu0  ;;  %v773_v44 = vpop.f32.mrf.mxu1 }
  0xf7   : > { %v455_v30 = vadd.f32 %v454_v26, %v439_v25  ;;  %v443_v37 = vmax.f32 %v765_v27, 0.0  ;;  %v451_v56 = vmax.f32 %v773_v44, 0.0 }
  0xf8   : > { %v392_v31 = vpop.f32.mrf.mxu0  ;;  %v424_v49 = vpop.f32.mrf.mxu1 }
  0xf9   : > { %v456_v32 = vadd.f32 %v455_v30, %v440_v29  ;;  %v441_v33 = vmax.f32 %v392_v31, 0.0  ;;  %v449_v53 = vmax.f32 %v424_v49, 0.0 }
  0xfb   : > { %v457_v36 = vadd.f32 %v456_v32, %v441_v33 }
  0xfd   : > { %v458_v38 = vadd.f32 %v457_v36, %v442_v35 }
  0xff   : > { %v459_v41 = vadd.f32 %v458_v38, %v443_v37 }
 0x101   : > { %v460_v43 = vadd.f32 %v459_v41, %v444_v40 }
 0x103   : > { %v461_v46 = vadd.f32 %v460_v43, %v445_v42 }
 0x105   : > { %v462_v48 = vadd.f32 %v461_v46, %v446_v45 }
 0x107   : > { %v463_v51 = vadd.f32 %v462_v48, %v447_v47 }
 0x109   : > { %v464_v52 = vadd.f32 %v463_v51, %v448_v50 }
 0x10b   : > { %v465_v55 = vadd.f32 %v464_v52, %v449_v53 }
 0x10d   : > { %v466_v57 = vadd.f32 %v465_v55, %v450_v54 }
 0x10f   : > { %v467_v58 = vadd.f32 %v466_v57, %v451_v56 }
 0x111   : > { %v468_v59 = vrot.slane %v467_v58, 4 }
 0x113   : > { %v469_v60 = vadd.f32 %v468_v59, %v467_v58 }
 0x115   : > { %v470_v61 = vrot.slane %v469_v60, 2 }
 0x117   : > { %v471_v62 = vadd.f32 %v470_v61, %v469_v60 }
 0x119   : > { %v472_v63 = vrot.slane %v471_v62, 1 }
 0x11b   : > { %v473_v1 = vadd.f32 %v472_v63, %v471_v62  ;;  %479 = sbr.rel (%p721_p10) target bundleno = 520 (0x208), region = 40 }
 0x11d   : > { %v474_v2 = vadd.f32 %v473_v1, %v452_v0 }
 0x11f   : > { %475 = vst [vmem:[#allocation2] sm:$0x1] %v474_v2 }
 0x120   : > { %v870_v3 = vld [vmem:[%s1087_s2 + $0x38] sm:$0xff]   ;;  %v935_v4 = vmov 0.0   ;;  %v871_v5 = vld [vmem:[%s1087_s2 + $0x30] sm:$0xff]   ;;  %vm936_vm1 = vmmov 0   ;;  %v872_v6 = vld [vmem:[%s1087_s2 + $0x28] sm:$0xff]   ;;  %v587_v15 = vlaneseq }
 0x121   : > { %774 = vmatprep.subr.bf16.mxu0 %v935_v4  ;;  %790 = vmatprep.mubr.msk.bf16.mxu0 %vm936_vm1, %v935_v4  ;;  %v873_v7 = vld [vmem:[%s1087_s2 + $0x20] sm:$0xff]   ;;  %v874_v8 = vld [vmem:[%s1087_s2 + $0x18] sm:$0xff]   ;;  %v875_v9 = vld [vmem:[%s1087_s2 + $0x10] sm:$0xff]  }
 0x122   : > { %775 = vmatpush3.bf16.msra.mxu0 %v870_v3  ;;  %v876_v10 = vld [vmem:[%s1087_s2 + $0x8] sm:$0xff]   ;;  %v877_v13 = vld [vmem:[%s1087_s2] sm:$0xff]   ;;  %v588_v16 = vshrl.u32 %v587_v15, 7 }
 0x123   : > { %776 = vmatprep.subr.bf16.mxu0 %v935_v4 }
 0x124   : > { %v589_v17 = vsub.s32 0, %v588_v16 }
 0x126   : > { %777 = vmatpush3.bf16.msra.mxu0 %v871_v5  ;;  %v480_v11 = vld [vmem:[#allocation2] sm:$0x1] }
 0x127   : > { %778 = vmatprep.subr.bf16.mxu0 %v935_v4  ;;  %v481_v12 = vmul.f32 0.00390625, %v480_v11 }
 0x129   : > { %v482_v14 = vpack.c.bf16 %v481_v12, %v481_v12 }
 0x12a   : > { %779 = vmatpush3.bf16.msra.mxu0 %v872_v6 }
 0x12b   : > { %780 = vmatprep.subr.bf16.mxu0 %v935_v4 }
 0x12e   : > { %781 = vmatpush3.bf16.msra.mxu0 %v873_v7 }
 0x12f   : > { %782 = vmatprep.subr.bf16.mxu0 %v935_v4 }
 0x132   : > { %783 = vmatpush3.bf16.msra.mxu0 %v874_v8 }
 0x133   : > { %784 = vmatprep.subr.bf16.mxu0 %v935_v4 }
 0x136   : > { %785 = vmatpush3.bf16.msra.mxu0 %v875_v9 }
 0x137   : > { %786 = vmatprep.subr.bf16.mxu0 %v935_v4 }
 0x13a   : > { %787 = vmatpush3.bf16.msra.mxu0 %v876_v10 }
 0x13b   : > { %788 = vmatprep.subr.bf16.mxu0 %v935_v4 }
 0x13e   : > { %789 = vmatpush3.bf16.msra.mxu0 %v877_v13 }
 0x141   : > { %791 = vmatmul.mubr.bf16.vlgmr.msra.gmra.mxu0 %v482_v14 }
 0x201   : > { %v581_v18 = vpop.f32.mrf.mxu0 }
 0x202   : > { %v590_v19 = vrot.slane %v581_v18, %v589_v17 }
 0x203   : > { %v792_v20 = vpop.f32.mrf.mxu0 }
 0x204   : > { %591 = vst [vmem:[%s1010_s9] sm:$0xff] %v590_v19 }
 0x205   : > { %v584_v21 = vpop.f32.mrf.mxu0 }
 0x207   : > { %v793_v22 = vpop.f32.mrf.mxu0 }
 0x208 PF: > { %s13_s18 = sadd.s32 1, %s932_s18   ;;  %s1089_s12 = smov %s920_s15 }
 0x209   : > { %p10_p11 = scmp.ge.s32.totalorder %s13_s18, 10   ;;  %s1090_s13 = smov %s924_s16 }
 0x20a   : > { %s1091_s14 = smov %s928_s17  ;;  %s1092_s15 = smov %s1096_s19 }
 0x20b   : > { %s1093_s16 = smov %s1100_s20  ;;  %s1094_s17 = smov %s1104_s21 }
 0x20c   :  { %12 = sbr.rel (!%p10_p11) target bundleno = 4 (0x4), region = 70 }

</bundles_post_ra>
